<compile_context>
chip_gen: v7x
topology: tpu7x:2x2x1
jax: 0.10.0
libtpu: 0.0.40
codegen_flags: <defaults>
</compile_context>

<pallas_src>
import functools

import jax
import jax.numpy as jnp
import numpy as np
from jax.experimental import pallas as pl
from jax.experimental.pallas import tpu as pltpu


def _patch_embed_kernel(x_ref, w_ref, b_ref, o_ref):
    # x_ref: (tm, K)   im2col'd patches
    # w_ref: (K, dim)  flattened conv weight
    # b_ref: (1, dim)  bias
    # o_ref: (tm, dim)
    acc = jnp.dot(x_ref[...], w_ref[...], preferred_element_type=jnp.float32)
    # f32 accumulate + f32 bias add (v5e VPU has no bf16); cast only on store.
    o_ref[...] = (acc + b_ref[...]).astype(o_ref.dtype)


def prepare_params(weight, bias):
    """One-time parameter prep (keep OUT of the per-call jitted forward).

    weight: [dim, C, P, P] conv weight -> (K, dim) matmul weight, K = C*P*P
    bias:   [dim]                      -> (1, dim)
    """
    dim = weight.shape[0]
    K = weight.shape[1] * weight.shape[2] * weight.shape[3]
    w_mat = jnp.asarray(weight).reshape(dim, K).T          # (K, dim), conv order
    b_mat = jnp.asarray(bias).reshape(1, dim)
    return w_mat, b_mat


def _row_tile(M):
    """Row tile: big enough to sit on the HBM roofline (cap 2048 keeps the
    double-buffered working set under the default scoped VMEM on v5e/v6e/v7x),
    but never a single grid step so both v7x TensorCores get work."""
    half = (M + 1) // 2
    if half >= 2048:
        return 2048
    if half >= 256:
        return ((half + 255) // 256) * 256    # MXU/DMA friendly alignment
    return max(8, ((half + 7) // 8) * 8)      # sublane-aligned for tiny M


@functools.partial(jax.jit, static_argnames=("patch_size", "out_dtype"))
def patch_embed(x, w_mat, b_mat, *, patch_size, out_dtype=None):
    """x: [B, C, H, W]; w_mat: [C*P*P, dim]; b_mat: [1, dim]."""
    B, C, H, W = x.shape
    P = patch_size
    Hp, Wp = H // P, W // P
    K, dim = w_mat.shape
    out_dtype = x.dtype if out_dtype is None else out_dtype

    # --- glue: im2col of non-overlapping patches == Conv2d(k=s=P) lowering ---
    # [B, C, Hp, P, Wp, P] -> [B, Hp, Wp, C, P, P] -> [B*Hp*Wp, C*P*P]
    # TODO(synk): for large P (e.g. 16), fold the patch extraction into the
    # kernel (memory_space=pl.ANY input + manual row-strip DMA + on-chip
    # reorg) to avoid the materialized `patches` HBM round trip; at P=4 it is
    # only ~10-15% of total bytes so the host-side reshape/transpose is kept.
    patches = x.reshape(B, C, Hp, P, Wp, P)
    patches = jnp.transpose(patches, (0, 2, 4, 1, 3, 5))
    patches = patches.reshape(B * Hp * Wp, C * P * P)
    M = patches.shape[0]

    tm = _row_tile(M)
    grid = (pl.cdiv(M, tm),)   # cdiv grid: Pallas masks the ragged tail block

    cost = pl.CostEstimate(
        flops=2 * M * K * dim,
        transcendentals=0,
        bytes_accessed=(M * K + K * dim) * x.dtype.itemsize
        + M * dim * jnp.dtype(out_dtype).itemsize,
    )

    out = pl.pallas_call(
        _patch_embed_kernel,
        out_shape=jax.ShapeDtypeStruct((M, dim), out_dtype),
        grid=grid,
        in_specs=[
            pl.BlockSpec((tm, K), lambda i: (i, 0)),
            pl.BlockSpec((K, dim), lambda i: (0, 0)),   # resident, fetched once
            pl.BlockSpec((1, dim), lambda i: (0, 0)),
        ],
        out_specs=pl.BlockSpec((tm, dim), lambda i: (i, 0)),
        compiler_params=pltpu.CompilerParams(
            dimension_semantics=("parallel",),
        ),
        cost_estimate=cost,
    )(patches, w_mat, b_mat)

    # [B*Hp*Wp, dim] -> [B, Hp, Wp, dim]  (== conv output permuted to NHWC)
    return out.reshape(B, Hp, Wp, dim)


if __name__ == "__main__":
    # Small shapes consistent with the module's forward: 3 input channels
    # (fixed by the module), square image divisible by patch_size.
    B, C, H, W = 2, 3, 16, 16
    dim, patch_size = 32, 4

    key = jax.random.PRNGKey(0)
    kx, kw, kb = jax.random.split(key, 3)
    x = jax.random.normal(kx, (B, C, H, W), dtype=jnp.float32)
    # deterministic synthetic Conv2d params: weight [dim, C, P, P], bias [dim]
    weight = jax.random.normal(kw, (dim, C, patch_size, patch_size),
                               dtype=jnp.float32) * 0.02
    bias = jax.random.normal(kb, (dim,), dtype=jnp.float32) * 0.02

    # one-time prep, outside the jitted per-call forward
    w_mat, b_mat = prepare_params(weight, bias)

    # reference: real strided conv, then NCHW -> NHWC permute
    ref = jax.lax.conv_general_dilated(
        x, weight,
        window_strides=(patch_size, patch_size),
        padding="VALID",
        dimension_numbers=("NCHW", "OIHW", "NCHW"),
    ) + bias.reshape(1, dim, 1, 1)
    ref = jnp.transpose(ref, (0, 2, 3, 1))

    # f32 output (module-faithful semantics)
    y = patch_embed(x, w_mat, b_mat, patch_size=patch_size)
    y = jax.block_until_ready(y)
    assert y.shape == (B, H // patch_size, W // patch_size, dim)
    np.testing.assert_allclose(np.asarray(y), np.asarray(ref),
                               rtol=1e-5, atol=1e-5)

    # bf16-output fast path (f32 accumulate, cast on the final store only)
    y_bf16 = patch_embed(x, w_mat, b_mat, patch_size=patch_size,
                         out_dtype=jnp.bfloat16)
    y_bf16 = jax.block_until_ready(y_bf16)
    np.testing.assert_allclose(np.asarray(y_bf16, dtype=np.float32),
                               np.asarray(ref), rtol=2e-2, atol=1e-2)

    print("KERNEL_OK")
</pallas_src>

<mosaic_0001>
module attributes {stable_mosaic.version = 11 : i64} {
  func.func @_patch_embed_kernel(%arg0: i32, %arg1: memref<16x48xf32, #tpu.memory_space<vmem>>, %arg2: memref<48x32xf32, #tpu.memory_space<vmem>>, %arg3: memref<1x32xf32, #tpu.memory_space<vmem>>, %arg4: memref<16x32xf32, #tpu.memory_space<vmem>>) attributes {dimension_semantics = [#tpu.dimension_semantics<parallel>], iteration_bounds = array<i64: 2>, scalar_prefetch = 0 : i64, scratch_operands = 0 : i64, tpu.core_type = #tpu.core_type<tc>, window_params = [{transform_indices = @transform_0, window_bounds = array<i64: 16, 48>}, {pipeline_mode = #tpu.pipeline_mode<synchronous>, transform_indices = @transform_1, window_bounds = array<i64: 48, 32>}, {pipeline_mode = #tpu.pipeline_mode<synchronous>, transform_indices = @transform_2, window_bounds = array<i64: 1, 32>}, {transform_indices = @transform_3, window_bounds = array<i64: 16, 32>}]} {
    %c0 = arith.constant 0 : index
    %c0_0 = arith.constant 0 : index
    %0 = vector.load %arg1[%c0, %c0_0] : memref<16x48xf32, #tpu.memory_space<vmem>>, vector<16x48xf32>
    %c0_1 = arith.constant 0 : index
    %c0_2 = arith.constant 0 : index
    %1 = vector.load %arg2[%c0_1, %c0_2] : memref<48x32xf32, #tpu.memory_space<vmem>>, vector<48x32xf32>
    %cst = arith.constant dense<0.000000e+00> : vector<16x32xf32>
    %2 = tpu.matmul %0, %1, %cst {dimension_numbers = #tpu.dot_dimension_numbers<[1], [0], [0], [1], [0, 0, 1, 1], [], []>} : vector<16x48xf32>, vector<48x32xf32>, vector<16x32xf32> -> vector<16x32xf32>
    %c0_3 = arith.constant 0 : index
    %c0_4 = arith.constant 0 : index
    %3 = vector.load %arg3[%c0_3, %c0_4] : memref<1x32xf32, #tpu.memory_space<vmem>>, vector<1x32xf32>
    %4 = vector.broadcast %3 : vector<1x32xf32> to vector<16x32xf32>
    %5 = arith.addf %2, %4 : vector<16x32xf32>
    %c0_5 = arith.constant 0 : index
    %c0_6 = arith.constant 0 : index
    %6 = vector.load %arg4[%c0_5, %c0_6] : memref<16x32xf32, #tpu.memory_space<vmem>>, vector<16x32xf32>
    tpu.vector_store %arg4[%c0_5, %c0_6], %5 {strides = array<i32>} : memref<16x32xf32, #tpu.memory_space<vmem>>, vector<16x32xf32>,
    return
  }
  func.func @transform_0(%arg0: i32) -> (i32, i32) {
    %c0_i32 = arith.constant 0 : i32
    %c0_i32_0 = arith.constant 0 : i32
    return %arg0, %c0_i32 : i32, i32
  }
  func.func @transform_1(%arg0: i32) -> (i32, i32) {
    %c0_i32 = arith.constant 0 : i32
    %c0_i32_0 = arith.constant 0 : i32
    %c0_i32_1 = arith.constant 0 : i32
    return %c0_i32, %c0_i32_0 : i32, i32
  }
  func.func @transform_2(%arg0: i32) -> (i32, i32) {
    %c0_i32 = arith.constant 0 : i32
    %c0_i32_0 = arith.constant 0 : i32
    %c0_i32_1 = arith.constant 0 : i32
    return %c0_i32, %c0_i32_0 : i32, i32
  }
  func.func @transform_3(%arg0: i32) -> (i32, i32) {
    %c0_i32 = arith.constant 0 : i32
    %c0_i32_0 = arith.constant 0 : i32
    return %arg0, %c0_i32 : i32, i32
  }
}

</mosaic_0001>

<bundles_post_ra>
// kernel: patch_embed.1
= control target key start
LH: loop header
LB: loop body
LE: loop exit
PB: predicated region body
PF: predicated region fallthrough
CT: control target
= control target key end

     0   :  { %8 = vsyncpa [#allocation3], 0  ;;  %s650_s0 = inlined_call_operand.vmem [shape: f32[32,48], index: 0, kind: input, shape index: {}]   ;;  %s651_s1 = inlined_call_operand.vmem [shape: f32[48,32], index: 1, kind: input, shape index: {}]   ;;  %s652_s2 = inlined_call_operand.vmem [shape: f32[1,32], index: 2, kind: input, shape index: {}]   ;;  %s653_s3 = inlined_call_operand.hbm [shape: f32[32,32], index: 3, kind: output, shape index: {}]  }
   0x1   :  { %10 = vsyncpa [#allocation3 + $0x1], 0  ;;  %s527_s12 = smov 0   ;;  %s529_s13 = smov 0  }
   0x2   :  { %s531_s14 = smov 0   ;;  %s533_s15 = smov 0  }
   0x3 LB: > { %s548_s16 = sadd.s32 4294967295, %s502_s15   ;;  %s348_s17 = sadd.s32 4294967294, %s502_s15   ;;  %s502_s15 = sphi %s533_s15, %s659_s15   ;;  %s498_s14 = sphi %s531_s14, %s658_s14   ;;  %s494_s13 = sphi %s529_s13, %s657_s13   ;;  %s490_s12 = sphi %s527_s12, %s656_s12  }
   0x4   : > { %s552_s18 = sadd.s32 1, %s502_s15   ;;  %s91_s19 = sadd.s32 1, %s498_s14 }
   0x5   : > { %s88_s20 = ssub.s32 %s502_s15, %s552_s18  ;;  %p101_p0 = scmp.ne.s32.totalorder %s498_s14, %s494_s13 }
   0x6   : > { %p89_p1 = scmp.eq.s32.totalorder %s88_s20, 0  ;;  %p102_p2 = scmp.eq.s32.totalorder %s548_s16, 1 }
   0x7   : > { %p107_p3 = scmp.ne.s32.totalorder %s494_s13, %s490_s12  ;;  %p108_p4 = scmp.eq.s32.totalorder %s348_s17, 1 }
   0x8   : > { %s563_s21 = scalar_select %p89_p1, %s498_s14, %s91_s19  }
   0x9   : > { %p565_p5 = por %p102_p2, %p101_p0  ;;  %p569_p6 = por %p108_p4, %p107_p3 }
   0xa   : > { %p351_p7 = scmp.ge.s32.totalorder %s502_s15, 1  ;;  %p141_p8 = scmp.lt.s32.totalorder %s502_s15, 3 }
   0xc   : > { %p142_p9 = pnand %p351_p7, %p141_p8 }
   0xd   : > { %v174_v0 = vld [vmem:[%s651_s1] sm:$0xff] (!%p142_p9)  ;;  %v175_v1 = vld [vmem:[%s651_s1 + $0x8] sm:$0xff] (!%p142_p9)  ;;  %v176_v2 = vld [vmem:[%s651_s1 + $0x10] sm:$0xff] (!%p142_p9)  ;;  %s353_s30 = sshll.u32 (!%p142_p9), %s548_s16, 1  ;;  %vm187_vm0 = vcmask (!%p142_p9), 392192   ;;  %s162_s20 = sand.u32 (!%p142_p9), 1, %s494_s13  }
   0xe   : > { %145 = sbr.rel (%p142_p9) target bundleno = 258 (0x102), region = 32  ;;  %v387_v3 = vpack.c.bf16 (!%p142_p9), %v175_v1, %v174_v0  ;;  %v177_v4 = vld [vmem:[%s651_s1 + $0x18] sm:$0xff] (!%p142_p9)  ;;  %p166_p10 = scmp.lt.s32.totalorder (!%p142_p9), %s353_s30, 3  ;;  %v178_v6 = vld [vmem:[%s651_s1 + $0x20] sm:$0xff] (!%p142_p9)  ;;  %v179_v7 = vld [vmem:[%s651_s1 + $0x28] sm:$0xff] (!%p142_p9)  ;;  %vm269_vm1 = vcmask (!%p142_p9), 261120  }
   0xf   : > { %v391_v5 = vpack.c.bf16 (!%p142_p9), %v177_v4, %v176_v2  ;;  %v395_v8 = vpack.c.bf16 (!%p142_p9), %v179_v7, %v178_v6  ;;  %s352_s24 = sshll.u32 (!%p142_p9), %s162_s20, 4  ;;  %v355_v11 = vld [vmem:[%s652_s2] ss:$0 sm:$0xff] (!%p142_p9)  ;;  %s363_s29 = sshll.u32 (!%p142_p9), %s548_s16, 8 }
  0x10   : > { %388 = vmatprep.subr.bf16.mxu0 (!%p142_p9), %v387_v3  ;;  %s164_s27 = scalar_lea.vmem (!%p142_p9), [#allocation2], %s352_s24  ;;  %s607_s5 = scalar_lea.hbm (!%p142_p9), %s653_s3, %s363_s29 }
  0x11   : > { %390 = vmatpush3.bf16.msra.mxu0 (!%p142_p9), %v387_v3  ;;  %s286_s28 = sshll.u32 (!%p142_p9), %s164_s27, 4  ;;  %s609_s6 = scalar_lea.sflag (!%p142_p9), [#allocation3], %s162_s20  ;;  %s602_s28 = int_to_ptr.vmem [resolvable:$true] %s286_s28 }
  0x12   : > { %392 = vmatprep.subr.bf16.mxu0 (!%p142_p9), %v391_v5  ;;  %s440_s16 = scalar_lea.vmem (!%p142_p9), %s602_s28, 256  ;;  %s504_s7 = smov (!%p142_p9), [#allocation2]  }
  0x13   : > { %p441_p11 = scmp.ne.s32.totalorder (!%p142_p9), %s602_s28, %s440_s16  ;;  %s444_s8 = sshll.u32 (!%p142_p9), %s504_s7, 4  ;;  %s445_s8 = int_to_ptr.vmem [resolvable:$false] %s444_s8 }
  0x14   : > { %s446_s9 = scalar_lea.vmem (!%p142_p9), %s445_s8, 512  ;;  %p447_p0 = scmp.lt.s32.totalorder (!%p142_p9), %s602_s28, %s445_s8 }
  0x15   : > { %s661_s30 = smov (!%p166_p10, %s353_s30), 3  ;;  %394 = vmatpush3.bf16.msra.mxu0 %v391_v5  ;;  %p442_p12 = pnand %p441_p11, %p565_p5 }
  0x16   : > { %s354_s10 = sshll.u32 %s661_s30, 3  ;;  %396 = vmatprep.subr.bf16.mxu0 %v395_v8  ;;  %p448_p1 = scmp.lt.s32.totalorder %s446_s9, %s440_s16 }
  0x17   : > { %s169_s19 = scalar_lea.vmem %s650_s0, %s354_s10  ;;  %p443_p13 = pneg %p442_p12 }
  0x18   : > { %v172_v9 = vld [vmem:[%s169_s19] sm:$0xff]  ;;  %v173_v10 = vld [vmem:[%s169_s19 + $0x8] sm:$0xff]  ;;  %p449_p2 = por %p448_p1, %p447_p0 }
  0x19   : > { %384 = vmatprep.mubr.msk.f32.mxu0 %vm187_vm0, %v172_v9  ;;  %398 = vmatpush3.bf16.msra.mxu0 %v395_v8 }
  0x1a   : > { %p450_p3 = pnand %p449_p2, %p443_p13 }
  0x1c   : > { %385 = vmatmul.mubr.msk.f32.vlgmr.msra.gmra.mrb[0].mxu0 %vm187_vm0, %v173_v10 }
  0xef   : > { %v386_v12 = vpop.f32.mrb[0].mxu0 }
  0xf0   : > { %v266_v13 = vadd.f32 %v386_v12, %v355_v11  ;;  %v260_v14 = vpop.f32.mrb[1].mxu0 }
  0xf1   : > { %v261_v15 = vadd.f32 %v355_v11, %v260_v14 }
  0xf2   : > { %271 = vst.msk [vmem:[%s164_s27 + $0x8] sm:$0xff] %vm269_vm1, %v266_v13 }
  0xf3   : > { %270 = vst.msk [vmem:[%s164_s27] sm:$0xff] %vm269_vm1, %v261_v15 }
  0xf4   : > { %453 = shalt.err (!%p450_p3)
}
  0xf5   : > { %s454_s10 = scalar_lea.hbm %s607_s5, 256  ;;  %s458_s19 = scalar_lea.hbm %s653_s3, 512 }
  0xf6   : > { %p455_p4 = scmp.ne.s32.totalorder %s607_s5, %s454_s10  ;;  %p459_p9 = scmp.lt.u32.totalorder %s607_s5, %s653_s3 }
  0xf7   : > { %p460_p10 = scmp.lt.u32.totalorder %s458_s19, %s454_s10  ;;  %p462_p12 = scmp.lt.u32.totalorder %s454_s10, %s607_s5 }
  0xf8   : > { %p456_p7 = pnand %p455_p4, %p565_p5 }
  0xf9   : > { %p461_p11 = por %p460_p10, %p459_p9 }
  0xfa   : > { %p457_p8 = pneg %p456_p7 }
  0xfb   : > { %p463_p13 = por %p462_p12, %p461_p11 }
  0xfd   : > { %p464_p0 = pnand %p463_p13, %p457_p8 }
  0xff   : > { %467 = shalt.err (!%p464_p0)
}
 0x100   : > { %s505_s25 = smov 128   ;;  %s506_s26 = smov 8  }
 0x101   : > { %399 = dma.vmem_to_hbm [thread:$0]  (%p565_p5), %s602_s28, 256, %s607_s5, %s609_s6, %s505_s25, %s505_s25, %s506_s26  }
 0x102 PF: > { %p405_p1 = scmp.ge.s32.totalorder %s502_s15, 2  ;;  %s301_s27 = sand.u32 1, %s490_s12  }
 0x103   : > { %s302_s29 = scalar_lea.sflag [#allocation3], %s301_s27 }
 0x104   : > { %p402_p2 = pnand %p405_p1, %p569_p6 }
 0x106   : > { %485 = dma.done.wait (!%p402_p2), %s302_s29, 256  }
 0x107   : > { %487 = vsyncadd (!%p402_p2), %s302_s29, 4294967040  ;;  %p13_p3 = scmp.ge.s32.totalorder %s552_s18, 4   ;;  %s656_s12 = smov %s494_s13 }
 0x108   : > { %s657_s13 = smov %s498_s14  ;;  %s658_s14 = smov %s563_s21 }
 0x109   : > { %s659_s15 = smov %s552_s18  ;;  %15 = sbr.rel (!%p13_p3) target bundleno = 3 (0x3), region = 67 }
 0x110   :  { %307 = vsyncpa [#allocation3], 1 }
 0x111   :  { %309 = vsyncpa [#allocation3 + $0x1], 1 }

</bundles_post_ra>
